<compile_context>
chip_gen: v6e
topology: v6e:2x2x1
jax: 0.10.0
libtpu: 0.0.40
codegen_flags: <defaults>
</compile_context>

<pallas_src>
import jax
import jax.numpy as jnp
from jax import lax
from jax.experimental import pallas as pl
from jax.experimental.pallas import tpu as pltpu

_IN_FEATURES = 9
_OUT_FEATURES = 2
_LANE = 128
_CHUNK = 32        # sublane rows per inner compute step (multiple of 8)
_MAX_TBR = 1024    # sublane rows per grid step (131072 batch lanes, ~11 MiB dbl-buffered)


def _round_up(x, m):
    return ((x + m - 1) // m) * m


def _predictor_kernel(wb_ref, xt_ref, o_ref):
    """wb_ref: (20,) f32 SMEM  -- [w00..w08, w10..w18, b0, b1]
       xt_ref: (9, TBR, 128) f32 VMEM -- batch dense on sublane x lane
       o_ref : (2, TBR, 128) f32 VMEM
    """
    tbr = xt_ref.shape[1]
    chunk = _CHUNK if (tbr % _CHUNK == 0) else tbr
    n_chunks = tbr // chunk

    def compute_chunk(off):
        # Stream the 9 features once, accumulating both output rows, so only
        # {x_k, acc0, acc1} (~3 chunk-slabs) are live at any time.
        acc0 = None
        acc1 = None
        for k in range(_IN_FEATURES):
            xk = xt_ref[k, pl.ds(off, chunk), :]          # (chunk, 128), dense vregs
            t0 = xk * wb_ref[k]
            t1 = xk * wb_ref[_IN_FEATURES + k]
            acc0 = t0 if acc0 is None else acc0 + t0
            acc1 = t1 if acc1 is None else acc1 + t1
        # bias added once after accumulation (scalar broadcast)
        o_ref[0, pl.ds(off, chunk), :] = acc0 + wb_ref[_IN_FEATURES * _OUT_FEATURES + 0]
        o_ref[1, pl.ds(off, chunk), :] = acc1 + wb_ref[_IN_FEATURES * _OUT_FEATURES + 1]

    if n_chunks == 1:
        compute_chunk(0)
    else:
        def body(c, carry):
            compute_chunk(pl.multiple_of(c * chunk, chunk))
            return carry
        lax.fori_loop(0, n_chunks, body, 0)


def predictor_forward(x, w, b):
    """Pallas equivalent of Predictor.forward: y = x @ w.T + b.

    x: (B, 9) f32, w: (2, 9) f32 (PyTorch Linear weight layout), b: (2,) f32.
    Returns (B, 2) f32.
    """
    B = x.shape[0]
    assert x.shape[1] == _IN_FEATURES
    assert w.shape == (_OUT_FEATURES, _IN_FEATURES) and b.shape == (_OUT_FEATURES,)

    nb = pl.cdiv(B, _LANE)          # number of 128-wide lane groups
    b_pad = nb * _LANE

    # Layout plumbing: transpose (B,9)->(9,B), pad only to the next lane
    # multiple, reshape to the lane-dense 3-D slab. (Fused away if the
    # producer emits this layout directly; see TODO above.)
    xt = x.astype(jnp.float32).T                               # (9, B)
    if b_pad != B:
        xt = jnp.pad(xt, ((0, 0), (0, b_pad - B)))             # (9, b_pad)
    xt3 = xt.reshape(_IN_FEATURES, nb, _LANE)                  # (9, NB, 128)

    # Tile along the NB (sublane-group) axis.
    if nb <= _CHUNK:
        tbr = nb                                               # one small tile
    else:
        # >=2 tiles so the "parallel" grid can shard across v7x's 2 TCs,
        # chunk-aligned, capped to keep double-buffered VMEM ~11 MiB.
        tbr = min(_MAX_TBR, _round_up(pl.cdiv(nb, 2), _CHUNK))
    n_tiles = pl.cdiv(nb, tbr)

    # Flat scalar table: 18 weights followed by 2 biases, SMEM-resident.
    wb = jnp.concatenate(
        [w.astype(jnp.float32).reshape(-1), b.astype(jnp.float32).reshape(-1)]
    )  # (20,)

    out3 = pl.pallas_call(
        _predictor_kernel,
        out_shape=jax.ShapeDtypeStruct((_OUT_FEATURES, nb, _LANE), jnp.float32),
        grid=(n_tiles,),
        in_specs=[
            pl.BlockSpec(memory_space=pltpu.SMEM),                        # (20,) scalars
            pl.BlockSpec((_IN_FEATURES, tbr, _LANE), lambda i: (0, i, 0)),
        ],
        out_specs=pl.BlockSpec((_OUT_FEATURES, tbr, _LANE), lambda i: (0, i, 0)),
        compiler_params=pltpu.CompilerParams(
            dimension_semantics=("parallel",),     # batch grid: megacore-shardable
            vmem_limit_bytes=32 * 1024 * 1024,
        ),
    )(wb, xt3)

    return out3.reshape(_OUT_FEATURES, b_pad)[:, :B].T         # back to (B, 2)


def init_params(key):
    # nn.Linear(9, 2) shapes with PyTorch-style uniform init bound.
    kw, kb = jax.random.split(key)
    bound = 1.0 / jnp.sqrt(float(_IN_FEATURES))
    w = jax.random.uniform(kw, (_OUT_FEATURES, _IN_FEATURES), jnp.float32, -bound, bound)
    b = jax.random.uniform(kb, (_OUT_FEATURES,), jnp.float32, -bound, bound)
    return w, b


if __name__ == "__main__":
    key = jax.random.PRNGKey(0)
    kx, kp = jax.random.split(key)

    B = 8
    x = jax.random.normal(kx, (B, _IN_FEATURES), jnp.float32)
    w, b = init_params(kp)

    y = predictor_forward(x, w, b)
    y = jax.block_until_ready(y)

    # Reference: same math as PyTorch Linear.
    y_ref = x @ w.T + b
    assert y.shape == (B, _OUT_FEATURES)
    assert jnp.allclose(y, y_ref, atol=1e-5, rtol=1e-5)

    # Secondary check: batch that is not a lane multiple (ragged pad/slice path).
    B2 = 300
    x2 = jax.random.normal(kx, (B2, _IN_FEATURES), jnp.float32)
    y2 = jax.block_until_ready(predictor_forward(x2, w, b))
    assert jnp.allclose(y2, x2 @ w.T + b, atol=1e-5, rtol=1e-5)

    print("KERNEL_OK")
</pallas_src>

<mosaic_0001>
module attributes {stable_mosaic.version = 11 : i64} {
  func.func @_predictor_kernel(%arg0: i32, %arg1: memref<20xf32, #tpu.memory_space<smem>>, %arg2: memref<9x1x128xf32, #tpu.memory_space<vmem>>, %arg3: memref<2x1x128xf32, #tpu.memory_space<vmem>>) attributes {dimension_semantics = [#tpu.dimension_semantics<parallel>], iteration_bounds = array<i64: 1>, scalar_prefetch = 0 : i64, scratch_operands = 0 : i64, tpu.core_type = #tpu.core_type<tc>, window_params = [{transform_indices = @transform_0, window_bounds = array<i64: 20>}, {transform_indices = @transform_1, window_bounds = array<i64: 9, 1, 128>}, {transform_indices = @transform_2, window_bounds = array<i64: 2, 1, 128>}]} {
    %c0 = arith.constant 0 : index
    %c0_0 = arith.constant 0 : index
    %c0_1 = arith.constant 0 : index
    %0 = vector.load %arg2[%c0, %c0_0, %c0_1] : memref<9x1x128xf32, #tpu.memory_space<vmem>>, vector<1x1x128xf32>
    %1 = vector.shape_cast %0 : vector<1x1x128xf32> to vector<1x128xf32>
    %c0_2 = arith.constant 0 : index
    %2 = memref.load %arg1[%c0_2] : memref<20xf32, #tpu.memory_space<smem>>
    %3 = vector.broadcast %2 : f32 to vector<1x128xf32>
    %4 = arith.mulf %1, %3 : vector<1x128xf32>
    %c9 = arith.constant 9 : index
    %5 = memref.load %arg1[%c9] : memref<20xf32, #tpu.memory_space<smem>>
    %6 = vector.broadcast %5 : f32 to vector<1x128xf32>
    %7 = arith.mulf %1, %6 : vector<1x128xf32>
    %c1 = arith.constant 1 : index
    %c0_3 = arith.constant 0 : index
    %c0_4 = arith.constant 0 : index
    %8 = vector.load %arg2[%c1, %c0_3, %c0_4] : memref<9x1x128xf32, #tpu.memory_space<vmem>>, vector<1x1x128xf32>
    %9 = vector.shape_cast %8 : vector<1x1x128xf32> to vector<1x128xf32>
    %c1_5 = arith.constant 1 : index
    %10 = memref.load %arg1[%c1_5] : memref<20xf32, #tpu.memory_space<smem>>
    %11 = vector.broadcast %10 : f32 to vector<1x128xf32>
    %12 = arith.mulf %9, %11 : vector<1x128xf32>
    %c10 = arith.constant 10 : index
    %13 = memref.load %arg1[%c10] : memref<20xf32, #tpu.memory_space<smem>>
    %14 = vector.broadcast %13 : f32 to vector<1x128xf32>
    %15 = arith.mulf %9, %14 : vector<1x128xf32>
    %16 = arith.addf %4, %12 : vector<1x128xf32>
    %17 = arith.addf %7, %15 : vector<1x128xf32>
    %c2 = arith.constant 2 : index
    %c0_6 = arith.constant 0 : index
    %c0_7 = arith.constant 0 : index
    %18 = vector.load %arg2[%c2, %c0_6, %c0_7] : memref<9x1x128xf32, #tpu.memory_space<vmem>>, vector<1x1x128xf32>
    %19 = vector.shape_cast %18 : vector<1x1x128xf32> to vector<1x128xf32>
    %c2_8 = arith.constant 2 : index
    %20 = memref.load %arg1[%c2_8] : memref<20xf32, #tpu.memory_space<smem>>
    %21 = vector.broadcast %20 : f32 to vector<1x128xf32>
    %22 = arith.mulf %19, %21 : vector<1x128xf32>
    %c11 = arith.constant 11 : index
    %23 = memref.load %arg1[%c11] : memref<20xf32, #tpu.memory_space<smem>>
    %24 = vector.broadcast %23 : f32 to vector<1x128xf32>
    %25 = arith.mulf %19, %24 : vector<1x128xf32>
    %26 = arith.addf %16, %22 : vector<1x128xf32>
    %27 = arith.addf %17, %25 : vector<1x128xf32>
    %c3 = arith.constant 3 : index
    %c0_9 = arith.constant 0 : index
    %c0_10 = arith.constant 0 : index
    %28 = vector.load %arg2[%c3, %c0_9, %c0_10] : memref<9x1x128xf32, #tpu.memory_space<vmem>>, vector<1x1x128xf32>
    %29 = vector.shape_cast %28 : vector<1x1x128xf32> to vector<1x128xf32>
    %c3_11 = arith.constant 3 : index
    %30 = memref.load %arg1[%c3_11] : memref<20xf32, #tpu.memory_space<smem>>
    %31 = vector.broadcast %30 : f32 to vector<1x128xf32>
    %32 = arith.mulf %29, %31 : vector<1x128xf32>
    %c12 = arith.constant 12 : index
    %33 = memref.load %arg1[%c12] : memref<20xf32, #tpu.memory_space<smem>>
    %34 = vector.broadcast %33 : f32 to vector<1x128xf32>
    %35 = arith.mulf %29, %34 : vector<1x128xf32>
    %36 = arith.addf %26, %32 : vector<1x128xf32>
    %37 = arith.addf %27, %35 : vector<1x128xf32>
    %c4 = arith.constant 4 : index
    %c0_12 = arith.constant 0 : index
    %c0_13 = arith.constant 0 : index
    %38 = vector.load %arg2[%c4, %c0_12, %c0_13] : memref<9x1x128xf32, #tpu.memory_space<vmem>>, vector<1x1x128xf32>
    %39 = vector.shape_cast %38 : vector<1x1x128xf32> to vector<1x128xf32>
    %c4_14 = arith.constant 4 : index
    %40 = memref.load %arg1[%c4_14] : memref<20xf32, #tpu.memory_space<smem>>
    %41 = vector.broadcast %40 : f32 to vector<1x128xf32>
    %42 = arith.mulf %39, %41 : vector<1x128xf32>
    %c13 = arith.constant 13 : index
    %43 = memref.load %arg1[%c13] : memref<20xf32, #tpu.memory_space<smem>>
    %44 = vector.broadcast %43 : f32 to vector<1x128xf32>
    %45 = arith.mulf %39, %44 : vector<1x128xf32>
    %46 = arith.addf %36, %42 : vector<1x128xf32>
    %47 = arith.addf %37, %45 : vector<1x128xf32>
    %c5 = arith.constant 5 : index
    %c0_15 = arith.constant 0 : index
    %c0_16 = arith.constant 0 : index
    %48 = vector.load %arg2[%c5, %c0_15, %c0_16] : memref<9x1x128xf32, #tpu.memory_space<vmem>>, vector<1x1x128xf32>
    %49 = vector.shape_cast %48 : vector<1x1x128xf32> to vector<1x128xf32>
    %c5_17 = arith.constant 5 : index
    %50 = memref.load %arg1[%c5_17] : memref<20xf32, #tpu.memory_space<smem>>
    %51 = vector.broadcast %50 : f32 to vector<1x128xf32>
    %52 = arith.mulf %49, %51 : vector<1x128xf32>
    %c14 = arith.constant 14 : index
    %53 = memref.load %arg1[%c14] : memref<20xf32, #tpu.memory_space<smem>>
    %54 = vector.broadcast %53 : f32 to vector<1x128xf32>
    %55 = arith.mulf %49, %54 : vector<1x128xf32>
    %56 = arith.addf %46, %52 : vector<1x128xf32>
    %57 = arith.addf %47, %55 : vector<1x128xf32>
    %c6 = arith.constant 6 : index
    %c0_18 = arith.constant 0 : index
    %c0_19 = arith.constant 0 : index
    %58 = vector.load %arg2[%c6, %c0_18, %c0_19] : memref<9x1x128xf32, #tpu.memory_space<vmem>>, vector<1x1x128xf32>
    %59 = vector.shape_cast %58 : vector<1x1x128xf32> to vector<1x128xf32>
    %c6_20 = arith.constant 6 : index
    %60 = memref.load %arg1[%c6_20] : memref<20xf32, #tpu.memory_space<smem>>
    %61 = vector.broadcast %60 : f32 to vector<1x128xf32>
    %62 = arith.mulf %59, %61 : vector<1x128xf32>
    %c15 = arith.constant 15 : index
    %63 = memref.load %arg1[%c15] : memref<20xf32, #tpu.memory_space<smem>>
    %64 = vector.broadcast %63 : f32 to vector<1x128xf32>
    %65 = arith.mulf %59, %64 : vector<1x128xf32>
    %66 = arith.addf %56, %62 : vector<1x128xf32>
    %67 = arith.addf %57, %65 : vector<1x128xf32>
    %c7 = arith.constant 7 : index
    %c0_21 = arith.constant 0 : index
    %c0_22 = arith.constant 0 : index
    %68 = vector.load %arg2[%c7, %c0_21, %c0_22] : memref<9x1x128xf32, #tpu.memory_space<vmem>>, vector<1x1x128xf32>
    %69 = vector.shape_cast %68 : vector<1x1x128xf32> to vector<1x128xf32>
    %c7_23 = arith.constant 7 : index
    %70 = memref.load %arg1[%c7_23] : memref<20xf32, #tpu.memory_space<smem>>
    %71 = vector.broadcast %70 : f32 to vector<1x128xf32>
    %72 = arith.mulf %69, %71 : vector<1x128xf32>
    %c16 = arith.constant 16 : index
    %73 = memref.load %arg1[%c16] : memref<20xf32, #tpu.memory_space<smem>>
    %74 = vector.broadcast %73 : f32 to vector<1x128xf32>
    %75 = arith.mulf %69, %74 : vector<1x128xf32>
    %76 = arith.addf %66, %72 : vector<1x128xf32>
    %77 = arith.addf %67, %75 : vector<1x128xf32>
    %c8 = arith.constant 8 : index
    %c0_24 = arith.constant 0 : index
    %c0_25 = arith.constant 0 : index
    %78 = vector.load %arg2[%c8, %c0_24, %c0_25] : memref<9x1x128xf32, #tpu.memory_space<vmem>>, vector<1x1x128xf32>
    %79 = vector.shape_cast %78 : vector<1x1x128xf32> to vector<1x128xf32>
    %c8_26 = arith.constant 8 : index
    %80 = memref.load %arg1[%c8_26] : memref<20xf32, #tpu.memory_space<smem>>
    %81 = vector.broadcast %80 : f32 to vector<1x128xf32>
    %82 = arith.mulf %79, %81 : vector<1x128xf32>
    %c17 = arith.constant 17 : index
    %83 = memref.load %arg1[%c17] : memref<20xf32, #tpu.memory_space<smem>>
    %84 = vector.broadcast %83 : f32 to vector<1x128xf32>
    %85 = arith.mulf %79, %84 : vector<1x128xf32>
    %86 = arith.addf %76, %82 : vector<1x128xf32>
    %87 = arith.addf %77, %85 : vector<1x128xf32>
    %c18 = arith.constant 18 : index
    %88 = memref.load %arg1[%c18] : memref<20xf32, #tpu.memory_space<smem>>
    %89 = vector.broadcast %88 : f32 to vector<1x128xf32>
    %90 = arith.addf %86, %89 : vector<1x128xf32>
    %c0_27 = arith.constant 0 : index
    %c0_28 = arith.constant 0 : index
    %c0_29 = arith.constant 0 : index
    %91 = vector.load %arg3[%c0_27, %c0_28, %c0_29] : memref<2x1x128xf32, #tpu.memory_space<vmem>>, vector<1x1x128xf32>
    %92 = vector.shape_cast %91 : vector<1x1x128xf32> to vector<1x128xf32>
    %93 = vector.shape_cast %90 : vector<1x128xf32> to vector<1x1x128xf32>
    tpu.vector_store %arg3[%c0_27, %c0_28, %c0_29], %93 {strides = array<i32>} : memref<2x1x128xf32, #tpu.memory_space<vmem>>, vector<1x1x128xf32>,
    %c19 = arith.constant 19 : index
    %94 = memref.load %arg1[%c19] : memref<20xf32, #tpu.memory_space<smem>>
    %95 = vector.broadcast %94 : f32 to vector<1x128xf32>
    %96 = arith.addf %87, %95 : vector<1x128xf32>
    %c1_30 = arith.constant 1 : index
    %c0_31 = arith.constant 0 : index
    %c0_32 = arith.constant 0 : index
    %97 = vector.load %arg3[%c1_30, %c0_31, %c0_32] : memref<2x1x128xf32, #tpu.memory_space<vmem>>, vector<1x1x128xf32>
    %98 = vector.shape_cast %97 : vector<1x1x128xf32> to vector<1x128xf32>
    %99 = vector.shape_cast %96 : vector<1x128xf32> to vector<1x1x128xf32>
    tpu.vector_store %arg3[%c1_30, %c0_31, %c0_32], %99 {strides = array<i32>} : memref<2x1x128xf32, #tpu.memory_space<vmem>>, vector<1x1x128xf32>,
    return
  }
  func.func @transform_0(%arg0: i32) -> i32 {
    %c0_i32 = arith.constant 0 : i32
    %c0_i32_0 = arith.constant 0 : i32
    return %c0_i32 : i32
  }
  func.func @transform_1(%arg0: i32) -> (i32, i32, i32) {
    %c0_i32 = arith.constant 0 : i32
    %c0_i32_0 = arith.constant 0 : i32
    %c0_i32_1 = arith.constant 0 : i32
    return %c0_i32, %arg0, %c0_i32_0 : i32, i32, i32
  }
  func.func @transform_2(%arg0: i32) -> (i32, i32, i32) {
    %c0_i32 = arith.constant 0 : i32
    %c0_i32_0 = arith.constant 0 : i32
    %c0_i32_1 = arith.constant 0 : i32
    return %c0_i32, %arg0, %c0_i32_0 : i32, i32, i32
  }
}

</mosaic_0001>

<bundles_post_ra>
// kernel: tpu_custom_call.1
= control target key start
LH: loop header
LB: loop body
LE: loop exit
PB: predicated region body
PF: predicated region fallthrough
CT: control target
= control target key end

     0   :  { %7 = vsyncpa [#allocation5], 0  ;;  %s276_s0 = inlined_call_operand.hbm [shape: f32[20], index: 0, kind: input, shape index: {}]   ;;  %s277_s1 = inlined_call_operand.hbm [shape: f32[9,1,128], index: 1, kind: input, shape index: {}]   ;;  %s278_s2 = inlined_call_operand.hbm [shape: f32[2,1,128], index: 2, kind: output, shape index: {}]  }
   0x1   :  { %8 = vsyncpa [#allocation3], 0 }
   0x2   :  { %9 = vsyncpa [#allocation4], 0  ;;  %s229_s9 = smov [#allocation2]   ;;  %s230_s12 = smov [#allocation6]  }
   0x3   :  { %17 = dma.hbm_to_smem %s276_s0, 16, %s229_s9, [#allocation5]  }
   0x4   :  { %s23_s13 = sshll.u32 %s230_s12, 4  ;;  %s24_s13 = int_to_ptr.vmem [resolvable:$true] %s23_s13 }
   0x5   :  { %s191_s14 = scalar_lea.vmem %s24_s13, 144  ;;  %s195_s15 = scalar_lea.vmem %s24_s13, 160 }
   0x6   :  { %p192_p0 = scmp.ne.s32.totalorder %s24_s13, %s191_s14  ;;  %p196_p1 = scmp.lt.s32.totalorder %s24_s13, %s24_s13 }
   0x7   :  { %p197_p2 = scmp.lt.s32.totalorder %s195_s15, %s191_s14 }
   0x9   :  { %p198_p3 = por %p197_p2, %p196_p1 }
   0xb   :  { %p199_p4 = pnand %p198_p3, %p192_p0 }
   0xd   :  { %202 = shalt.err (!%p199_p4)
}
   0xe   :  { %s231_s16 = smov 16   ;;  %s232_s17 = smov 1  }
   0xf   :  { %29 = dma.hbm_to_vmem [thread:$0]  %s277_s1, 144, %s24_s13, [#allocation3], %s231_s16, %s231_s16, %s232_s17  }
  0x10   :  { %223 = dma.done.wait [#allocation5], 16  }
  0x11   :  { %224 = vsyncadd [#allocation5], 4294967280 }
  0x12   :  { %225 = dma.done.wait [#allocation3], 144  }
  0x13   :  { %226 = vsyncadd [#allocation3], 4294967152 }
  0x14   :  { %36 = sfence }
  0x15   :  { %s38_s0 = sld [smem:[#allocation2]]  ;;  %v37_v0 = vld [vmem:[#allocation6] sm:$0x1]  ;;  %v45_v1 = vld [vmem:[#allocation6 + $0x1] sm:$0x1]  ;;  %s233_s10 = smov [#allocation7]  }
  0x16   :  { %s152_s20 = sld [smem:[#allocation2 + $0x1]]  ;;  %v55_v3 = vld [vmem:[#allocation6 + $0x2] sm:$0x1]  ;;  %v65_v6 = vld [vmem:[#allocation6 + $0x3] sm:$0x1]  ;;  %s138_s11 = sshll.u32 %s233_s10, 4  ;;  %s139_s11 = int_to_ptr.vmem [resolvable:$true] %s138_s11 }
  0x17   :  { %s154_s21 = sld [smem:[#allocation2 + $0x2]]  ;;  %v75_v11 = vld [vmem:[#allocation6 + $0x4] sm:$0x1]  ;;  %v85_v15 = vld [vmem:[#allocation6 + $0x5] sm:$0x1]  ;;  %s203_s12 = scalar_lea.vmem %s139_s11, 32 }
  0x18   :  { %s156_s22 = sld [smem:[#allocation2 + $0x3]]  ;;  %v95_v19 = vld [vmem:[#allocation6 + $0x6] sm:$0x1]  ;;  %v105_v23 = vld [vmem:[#allocation6 + $0x7] sm:$0x1]  ;;  %p204_p5 = scmp.ne.s32.totalorder %s139_s11, %s203_s12 }
  0x19   :  { %s158_s23 = sld [smem:[#allocation2 + $0x4]]  ;;  %v115_v27 = vld [vmem:[#allocation6 + $0x8] sm:$0x1]  ;;  %p208_p6 = scmp.lt.s32.totalorder %s139_s11, %s139_s11 }
  0x1a   :  { %s160_s24 = sld [smem:[#allocation2 + $0x5]]  ;;  %p209_p7 = scmp.lt.s32.totalorder %s203_s12, %s203_s12 }
  0x1b   :  { %v39_v2 = vstv %s38_s0  ;;  %s258_s25 = sld [smem:[#allocation2 + $0x6]] }
  0x1c   :  { %v40_v4 = vmul.f32 %v39_v2, %v37_v0  ;;  %v47_v5 = vstv %s152_s20  ;;  %s260_s1 = sld [smem:[#allocation2 + $0x7]]  ;;  %p210_p8 = por %p209_p7, %p208_p6 }
  0x1d   :  { %v48_v7 = vmul.f32 %v47_v5, %v45_v1  ;;  %v57_v8 = vstv %s154_s21  ;;  %s262_s26 = sld [smem:[#allocation2 + $0x8]] }
  0x1e   :  { %v58_v9 = vmul.f32 %v57_v8, %v55_v3  ;;  %v67_v10 = vstv %s156_s22  ;;  %s264_s27 = sld [smem:[#allocation2 + $0x12]]  ;;  %p211_p9 = pnand %p210_p8, %p204_p5 }
  0x1f   :  { %v52_v12 = vadd.f32 %v48_v7, %v40_v4  ;;  %v68_v13 = vmul.f32 %v67_v10, %v65_v6  ;;  %v77_v14 = vstv %s158_s23  ;;  %s151_s28 = sld [smem:[#allocation2 + $0x9]] }
  0x20   :  { %v87_v16 = vstv %s160_s24  ;;  %s153_s29 = sld [smem:[#allocation2 + $0xa]]  ;;  %v78_v18 = vmul.f32 %v77_v14, %v75_v11 }
  0x21   :  { %v62_v17 = vadd.f32 %v58_v9, %v52_v12  ;;  %s155_s30 = sld [smem:[#allocation2 + $0xb]]  ;;  %v97_v20 = vstv %s258_s25  ;;  %v88_v22 = vmul.f32 %v87_v16, %v85_v15 }
  0x22   :  { %s157_s3 = sld [smem:[#allocation2 + $0xc]]  ;;  %v107_v24 = vstv %s260_s1  ;;  %v98_v26 = vmul.f32 %v97_v20, %v95_v19 }
  0x23   :  { %v72_v21 = vadd.f32 %v68_v13, %v62_v17  ;;  %s159_s4 = sld [smem:[#allocation2 + $0xd]]  ;;  %v117_v28 = vstv %s262_s26  ;;  %v108_v33 = vmul.f32 %v107_v24, %v105_v23 }
  0x24   :  { %s161_s5 = sld [smem:[#allocation2 + $0xe]]  ;;  %v118_v36 = vmul.f32 %v117_v28, %v115_v27  ;;  %v125_v47 = vstv %s264_s27 }
  0x25   :  { %v82_v25 = vadd.f32 %v78_v18, %v72_v21  ;;  %v42_v29 = vstv %s151_s28  ;;  %s163_s6 = sld [smem:[#allocation2 + $0xf]] }
  0x26   :  { %v43_v30 = vmul.f32 %v42_v29, %v37_v0  ;;  %v50_v31 = vstv %s153_s29  ;;  %s165_s7 = sld [smem:[#allocation2 + $0x10]] }
  0x27   :  { %v92_v32 = vadd.f32 %v88_v22, %v82_v25  ;;  %v51_v34 = vmul.f32 %v50_v31, %v45_v1  ;;  %v60_v35 = vstv %s155_s30  ;;  %s167_s8 = sld [smem:[#allocation2 + $0x11]] }
  0x28   :  { %v61_v37 = vmul.f32 %v60_v35, %v55_v3  ;;  %v70_v38 = vstv %s157_s3  ;;  %s169_s9 = sld [smem:[#allocation2 + $0x13]] }
  0x29   :  { %v102_v39 = vadd.f32 %v98_v26, %v92_v32  ;;  %v53_v40 = vadd.f32 %v51_v34, %v43_v30  ;;  %v71_v41 = vmul.f32 %v70_v38, %v65_v6  ;;  %v80_v42 = vstv %s159_s4 }
  0x2a   :  { %v90_v43 = vstv %s161_s5  ;;  %v81_v46 = vmul.f32 %v80_v42, %v75_v11 }
  0x2b   :  { %v112_v44 = vadd.f32 %v108_v33, %v102_v39  ;;  %v63_v45 = vadd.f32 %v61_v37, %v53_v40  ;;  %v100_v48 = vstv %s163_s6  ;;  %v91_v51 = vmul.f32 %v90_v43, %v85_v15 }
  0x2c   :  { %v110_v52 = vstv %s165_s7  ;;  %v101_v55 = vmul.f32 %v100_v48, %v95_v19 }
  0x2d   :  { %v122_v49 = vadd.f32 %v118_v36, %v112_v44  ;;  %v73_v50 = vadd.f32 %v71_v41, %v63_v45  ;;  %v120_v56 = vstv %s167_s8  ;;  %v111_v58 = vmul.f32 %v110_v52, %v105_v23 }
  0x2e   :  { %v121_v60 = vmul.f32 %v120_v56, %v115_v27  ;;  %v129_v62 = vstv %s169_s9 }
  0x2f   :  { %v126_v53 = vadd.f32 %v125_v47, %v122_v49  ;;  %v83_v54 = vadd.f32 %v81_v46, %v73_v50 }
  0x31   :  { %127 = vst [vmem:[#allocation7] sm:$0x1] %v126_v53  ;;  %v93_v57 = vadd.f32 %v91_v51, %v83_v54 }
  0x33   :  { %v103_v59 = vadd.f32 %v101_v55, %v93_v57 }
  0x35   :  { %v113_v61 = vadd.f32 %v111_v58, %v103_v59 }
  0x37   :  { %v123_v63 = vadd.f32 %v121_v60, %v113_v61 }
  0x39   :  { %v130_v0 = vadd.f32 %v129_v62, %v123_v63 }
  0x3b   :  { %132 = vst [vmem:[#allocation7 + $0x1] sm:$0x1] %v130_v0 }
  0x3c   :  { %214 = shalt.err (!%p211_p9)
}
  0x3d   :  { %144 = dma.vmem_to_hbm [thread:$0]  %s139_s11, 32, %s278_s2, [#allocation4], %s231_s16, %s231_s16, %s232_s17  }
  0x3e   :  { %227 = dma.done.wait [#allocation4], 32  }
  0x3f   :  { %228 = vsyncadd [#allocation4], 4294967264 }
  0x40   :  { %148 = vsyncpa [#allocation3], 1 }
  0x41   :  { %149 = vsyncpa [#allocation4], 1 }
  0x42   :  { %150 = vsyncpa [#allocation5], 1 }

</bundles_post_ra>
